<compile_context>
chip_gen: v5e
topology: v5e:2x2
jax: 0.10.0
libtpu: 0.0.40
codegen_flags: <defaults>
</compile_context>

<pallas_src>
import jax
import jax.numpy as jnp
from jax.experimental import pallas as pl
from jax.experimental.pallas import tpu as pltpu

_BN_EPS = 1e-5
_LRELU_SLOPE = 0.01        # F.leaky_relu default negative_slope
_LANE = 128


def _pad_to(n, m=_LANE):
    return ((n + m - 1) // m) * m


def _pad2d(a, rows, cols, fill=0.0):
    r, c = a.shape
    return jnp.pad(a, ((0, rows - r), (0, cols - c)), constant_values=fill)


# --------------------------------------------------------------------------- #
# Fused kernel (built for a fixed number of hidden layers)
# refs = [x, (w_i, gamma_i, beta_i) * n_hidden, (w_last, b_last) if final, out]
# --------------------------------------------------------------------------- #
def _make_fused_mlp_kernel(n_hidden, apply_final):
    def kernel(*refs):
        o_ref = refs[-1]
        h = refs[0][...]                                        # (B, in_pad) bf16
        idx = 1
        for _ in range(n_hidden):
            w_ref, gamma_ref, beta_ref = refs[idx], refs[idx + 1], refs[idx + 2]
            idx += 3
            # Linear. Bias omitted: BN's mean subtraction cancels it exactly.
            z = jnp.dot(h.astype(jnp.bfloat16), w_ref[...],
                        preferred_element_type=jnp.float32)     # (B, m_pad) f32
            # BatchNorm1d, training mode (biased batch stats), single-pass sums.
            inv_n = jnp.float32(1.0 / z.shape[0])
            s = jnp.sum(z, axis=0, keepdims=True)
            ss = jnp.sum(z * z, axis=0, keepdims=True)
            mean = s * inv_n
            var = jnp.maximum(ss * inv_n - mean * mean, 0.0)
            zn = (z - mean) * jax.lax.rsqrt(var + _BN_EPS)
            zn = zn * gamma_ref[...] + beta_ref[...]
            # LeakyReLU (f32 elementwise math — fast path on all generations).
            h = jnp.where(zn >= 0.0, zn, _LRELU_SLOPE * zn)
        if apply_final:
            w_ref, b_ref = refs[idx], refs[idx + 1]
            z = jnp.dot(h.astype(jnp.bfloat16), w_ref[...],
                        preferred_element_type=jnp.float32) + b_ref[...]
            o_ref[...] = jax.nn.sigmoid(z)
        else:                       # mode == 'trans_DDC': no final projection
            o_ref[...] = h.astype(jnp.float32)

    return kernel


# --------------------------------------------------------------------------- #
# Parameter construction (deterministic, mirrors the PyTorch __init__ shapes)
# --------------------------------------------------------------------------- #
def init_mlp_params(key, h_list, out_features=229, in_features=2048):
    h_list1 = [in_features] + list(h_list)          # h_list1.insert(0, 2048)
    h_list2 = list(h_list) + [out_features]         # h_list2.append(out_features)

    params = {"linears": [], "bns": []}
    for fan_in, fan_out in zip(h_list1, h_list2):
        key, kw, kb = jax.random.split(key, 3)
        bound = 1.0 / jnp.sqrt(jnp.float32(fan_in))
        # stored as (in, out) = W.T relative to PyTorch's (out, in)
        w = jax.random.uniform(kw, (fan_in, fan_out), jnp.float32, -bound, bound)
        b = jax.random.uniform(kb, (1, fan_out), jnp.float32, -bound, bound)
        params["linears"].append((w, b))

    for m in h_list:
        key, kg, kbeta = jax.random.split(key, 3)
        gamma = 1.0 + 0.1 * jax.random.normal(kg, (1, m), jnp.float32)
        beta = 0.1 * jax.random.normal(kbeta, (1, m), jnp.float32)
        params["bns"].append((gamma, beta))
    return params


# --------------------------------------------------------------------------- #
# Forward builder: pads / casts weights once, returns a jitted forward(x)
# --------------------------------------------------------------------------- #
def build_mlp_forward(params, h_list, out_features=229, in_features=2048, mode="pre"):
    n_hidden = len(h_list)
    in_pad = _pad_to(in_features)

    # Pad & cast kernel operands once (zero-padded rows/cols keep results exact
    # in the valid region; padded output columns are sliced away below).
    kernel_consts = []
    for i in range(n_hidden):
        w, _b = params["linears"][i]          # hidden bias dropped (BN cancels it)
        gamma, beta = params["bns"][i]
        fi_pad, fo_pad = _pad_to(w.shape[0]), _pad_to(w.shape[1])
        kernel_consts.append(_pad2d(w, fi_pad, fo_pad).astype(jnp.bfloat16))
        kernel_consts.append(_pad2d(gamma, 1, fo_pad, fill=1.0))
        kernel_consts.append(_pad2d(beta, 1, fo_pad, fill=0.0))

    apply_final = (mode != "trans_DDC")
    if apply_final:
        w, b = params["linears"][-1]
        fi_pad, fo_pad = _pad_to(w.shape[0]), _pad_to(w.shape[1])
        kernel_consts.append(_pad2d(w, fi_pad, fo_pad).astype(jnp.bfloat16))
        kernel_consts.append(_pad2d(b, 1, fo_pad, fill=0.0))
        out_logical, out_pad = out_features, fo_pad
    else:
        out_logical, out_pad = h_list[-1], _pad_to(h_list[-1])

    kernel = _make_fused_mlp_kernel(n_hidden, apply_final)
    vmem = pl.BlockSpec(memory_space=pltpu.MemorySpace.VMEM)

    # TODO(synk): for large batch, tile the batch dim with a grid (parallel axis for
    # v7x's 2 TCs) and accumulate full-batch BN sums/sum-of-squares in VMEM scratch
    # with pl.when init/finalize; at batch=8 a single full-array block is fastest.
    @jax.jit
    def forward(x):
        x = x.astype(jnp.float32)             # matches PyTorch `x = x.float()`
        batch = x.shape[0]
        xb = jnp.pad(x, ((0, 0), (0, in_pad - in_features))).astype(jnp.bfloat16)
        y = pl.pallas_call(
            kernel,
            out_shape=jax.ShapeDtypeStruct((batch, out_pad), jnp.float32),
            in_specs=[vmem] * (1 + len(kernel_consts)),
            out_specs=vmem,
            compiler_params=pltpu.CompilerParams(
                vmem_limit_bytes=32 * 1024 * 1024),
        )(xb, *kernel_consts)
        return y[:, :out_logical]

    return forward


# --------------------------------------------------------------------------- #
if __name__ == "__main__":
    key = jax.random.PRNGKey(0)
    key, kx, kp = jax.random.split(key, 3)

    h_list = [64, 32]          # hidden sizes (module prepends 2048, appends 229)
    out_features = 229
    in_features = 2048         # fixed by the module (h_list1.insert(0, 2048))
    batch = 8

    x = jax.random.normal(kx, (batch, in_features), jnp.float32)
    params = init_mlp_params(kp, h_list, out_features=out_features,
                             in_features=in_features)
    forward = build_mlp_forward(params, h_list, out_features=out_features,
                                in_features=in_features, mode="pre")

    y = jax.block_until_ready(forward(x))

    assert y.shape == (batch, out_features), y.shape
    assert y.dtype == jnp.float32
    assert bool(jnp.all(jnp.isfinite(y)))
    assert bool(jnp.all((y >= 0.0) & (y <= 1.0)))   # sigmoid output range
    print("KERNEL_OK")
</pallas_src>

<mosaic_0001>
module attributes {stable_mosaic.version = 11 : i64} {
  func.func @kernel(%arg0: memref<8x2048xbf16, #tpu.memory_space<vmem>>, %arg1: memref<2048x128xbf16, #tpu.memory_space<vmem>>, %arg2: memref<1x128xf32, #tpu.memory_space<vmem>>, %arg3: memref<1x128xf32, #tpu.memory_space<vmem>>, %arg4: memref<128x128xbf16, #tpu.memory_space<vmem>>, %arg5: memref<1x128xf32, #tpu.memory_space<vmem>>, %arg6: memref<1x128xf32, #tpu.memory_space<vmem>>, %arg7: memref<128x256xbf16, #tpu.memory_space<vmem>>, %arg8: memref<1x256xf32, #tpu.memory_space<vmem>>, %arg9: memref<8x256xf32, #tpu.memory_space<vmem>>) attributes {dimension_semantics = [], scalar_prefetch = 0 : i64, scratch_operands = 0 : i64, tpu.core_type = #tpu.core_type<tc>} {
    %c0 = arith.constant 0 : index
    %c0_0 = arith.constant 0 : index
    %0 = vector.load %arg0[%c0, %c0_0] : memref<8x2048xbf16, #tpu.memory_space<vmem>>, vector<8x2048xbf16>
    %c0_1 = arith.constant 0 : index
    %c0_2 = arith.constant 0 : index
    %1 = vector.load %arg1[%c0_1, %c0_2] : memref<2048x128xbf16, #tpu.memory_space<vmem>>, vector<2048x128xbf16>
    %cst = arith.constant dense<0.000000e+00> : vector<8x128xf32>
    %2 = tpu.matmul %0, %1, %cst {dimension_numbers = #tpu.dot_dimension_numbers<[1], [0], [0], [1], [0, 0, 1, 1], [], []>} : vector<8x2048xbf16>, vector<2048x128xbf16>, vector<8x128xf32> -> vector<8x128xf32>
    %cst_3 = arith.constant dense<0.000000e+00> : vector<128xf32>
    %3 = vector.multi_reduction <add>, %2, %cst_3 [0] : vector<8x128xf32> to vector<128xf32>
    %4 = vector.shape_cast %3 : vector<128xf32> to vector<1x128xf32>
    %5 = arith.mulf %2, %2 : vector<8x128xf32>
    %cst_4 = arith.constant dense<0.000000e+00> : vector<128xf32>
    %6 = vector.multi_reduction <add>, %5, %cst_4 [0] : vector<8x128xf32> to vector<128xf32>
    %7 = vector.shape_cast %6 : vector<128xf32> to vector<1x128xf32>
    %cst_5 = arith.constant 1.250000e-01 : f32
    %8 = vector.broadcast %cst_5 : f32 to vector<1x128xf32>
    %9 = arith.mulf %4, %8 : vector<1x128xf32>
    %cst_6 = arith.constant 1.250000e-01 : f32
    %10 = vector.broadcast %cst_6 : f32 to vector<1x128xf32>
    %11 = arith.mulf %7, %10 : vector<1x128xf32>
    %12 = arith.mulf %9, %9 : vector<1x128xf32>
    %13 = arith.subf %11, %12 : vector<1x128xf32>
    %cst_7 = arith.constant 0.000000e+00 : f32
    %14 = vector.broadcast %cst_7 : f32 to vector<1x128xf32>
    %15 = arith.maximumf %13, %14 : vector<1x128xf32>
    %16 = vector.broadcast %9 : vector<1x128xf32> to vector<8x128xf32>
    %17 = arith.subf %2, %16 : vector<8x128xf32>
    %cst_8 = arith.constant 9.99999974E-6 : f32
    %18 = vector.broadcast %cst_8 : f32 to vector<1x128xf32>
    %19 = arith.addf %15, %18 : vector<1x128xf32>
    %20 = math.rsqrt %19 : vector<1x128xf32>
    %21 = vector.broadcast %20 : vector<1x128xf32> to vector<8x128xf32>
    %22 = arith.mulf %17, %21 : vector<8x128xf32>
    %c0_9 = arith.constant 0 : index
    %c0_10 = arith.constant 0 : index
    %23 = vector.load %arg2[%c0_9, %c0_10] : memref<1x128xf32, #tpu.memory_space<vmem>>, vector<1x128xf32>
    %24 = vector.broadcast %23 : vector<1x128xf32> to vector<8x128xf32>
    %25 = arith.mulf %22, %24 : vector<8x128xf32>
    %c0_11 = arith.constant 0 : index
    %c0_12 = arith.constant 0 : index
    %26 = vector.load %arg3[%c0_11, %c0_12] : memref<1x128xf32, #tpu.memory_space<vmem>>, vector<1x128xf32>
    %27 = vector.broadcast %26 : vector<1x128xf32> to vector<8x128xf32>
    %28 = arith.addf %25, %27 : vector<8x128xf32>
    %cst_13 = arith.constant 0.000000e+00 : f32
    %29 = vector.broadcast %cst_13 : f32 to vector<8x128xf32>
    %30 = arith.cmpf oge, %28, %29 : vector<8x128xf32>
    %cst_14 = arith.constant 0.00999999977 : f32
    %31 = vector.broadcast %cst_14 : f32 to vector<8x128xf32>
    %32 = arith.mulf %31, %28 : vector<8x128xf32>
    %33 = arith.select %30, %28, %32 : vector<8x128xi1>, vector<8x128xf32>
    %34 = arith.truncf %33 : vector<8x128xf32> to vector<8x128xbf16>
    %c0_15 = arith.constant 0 : index
    %c0_16 = arith.constant 0 : index
    %35 = vector.load %arg4[%c0_15, %c0_16] : memref<128x128xbf16, #tpu.memory_space<vmem>>, vector<128x128xbf16>
    %cst_17 = arith.constant dense<0.000000e+00> : vector<8x128xf32>
    %36 = tpu.matmul %34, %35, %cst_17 {dimension_numbers = #tpu.dot_dimension_numbers<[1], [0], [0], [1], [0, 0, 1, 1], [], []>} : vector<8x128xbf16>, vector<128x128xbf16>, vector<8x128xf32> -> vector<8x128xf32>
    %cst_18 = arith.constant dense<0.000000e+00> : vector<128xf32>
    %37 = vector.multi_reduction <add>, %36, %cst_18 [0] : vector<8x128xf32> to vector<128xf32>
    %38 = vector.shape_cast %37 : vector<128xf32> to vector<1x128xf32>
    %39 = arith.mulf %36, %36 : vector<8x128xf32>
    %cst_19 = arith.constant dense<0.000000e+00> : vector<128xf32>
    %40 = vector.multi_reduction <add>, %39, %cst_19 [0] : vector<8x128xf32> to vector<128xf32>
    %41 = vector.shape_cast %40 : vector<128xf32> to vector<1x128xf32>
    %cst_20 = arith.constant 1.250000e-01 : f32
    %42 = vector.broadcast %cst_20 : f32 to vector<1x128xf32>
    %43 = arith.mulf %38, %42 : vector<1x128xf32>
    %cst_21 = arith.constant 1.250000e-01 : f32
    %44 = vector.broadcast %cst_21 : f32 to vector<1x128xf32>
    %45 = arith.mulf %41, %44 : vector<1x128xf32>
    %46 = arith.mulf %43, %43 : vector<1x128xf32>
    %47 = arith.subf %45, %46 : vector<1x128xf32>
    %cst_22 = arith.constant 0.000000e+00 : f32
    %48 = vector.broadcast %cst_22 : f32 to vector<1x128xf32>
    %49 = arith.maximumf %47, %48 : vector<1x128xf32>
    %50 = vector.broadcast %43 : vector<1x128xf32> to vector<8x128xf32>
    %51 = arith.subf %36, %50 : vector<8x128xf32>
    %cst_23 = arith.constant 9.99999974E-6 : f32
    %52 = vector.broadcast %cst_23 : f32 to vector<1x128xf32>
    %53 = arith.addf %49, %52 : vector<1x128xf32>
    %54 = math.rsqrt %53 : vector<1x128xf32>
    %55 = vector.broadcast %54 : vector<1x128xf32> to vector<8x128xf32>
    %56 = arith.mulf %51, %55 : vector<8x128xf32>
    %c0_24 = arith.constant 0 : index
    %c0_25 = arith.constant 0 : index
    %57 = vector.load %arg5[%c0_24, %c0_25] : memref<1x128xf32, #tpu.memory_space<vmem>>, vector<1x128xf32>
    %58 = vector.broadcast %57 : vector<1x128xf32> to vector<8x128xf32>
    %59 = arith.mulf %56, %58 : vector<8x128xf32>
    %c0_26 = arith.constant 0 : index
    %c0_27 = arith.constant 0 : index
    %60 = vector.load %arg6[%c0_26, %c0_27] : memref<1x128xf32, #tpu.memory_space<vmem>>, vector<1x128xf32>
    %61 = vector.broadcast %60 : vector<1x128xf32> to vector<8x128xf32>
    %62 = arith.addf %59, %61 : vector<8x128xf32>
    %cst_28 = arith.constant 0.000000e+00 : f32
    %63 = vector.broadcast %cst_28 : f32 to vector<8x128xf32>
    %64 = arith.cmpf oge, %62, %63 : vector<8x128xf32>
    %cst_29 = arith.constant 0.00999999977 : f32
    %65 = vector.broadcast %cst_29 : f32 to vector<8x128xf32>
    %66 = arith.mulf %65, %62 : vector<8x128xf32>
    %67 = arith.select %64, %62, %66 : vector<8x128xi1>, vector<8x128xf32>
    %68 = arith.truncf %67 : vector<8x128xf32> to vector<8x128xbf16>
    %c0_30 = arith.constant 0 : index
    %c0_31 = arith.constant 0 : index
    %69 = vector.load %arg7[%c0_30, %c0_31] : memref<128x256xbf16, #tpu.memory_space<vmem>>, vector<128x256xbf16>
    %cst_32 = arith.constant dense<0.000000e+00> : vector<8x256xf32>
    %70 = tpu.matmul %68, %69, %cst_32 {dimension_numbers = #tpu.dot_dimension_numbers<[1], [0], [0], [1], [0, 0, 1, 1], [], []>} : vector<8x128xbf16>, vector<128x256xbf16>, vector<8x256xf32> -> vector<8x256xf32>
    %c0_33 = arith.constant 0 : index
    %c0_34 = arith.constant 0 : index
    %71 = vector.load %arg8[%c0_33, %c0_34] : memref<1x256xf32, #tpu.memory_space<vmem>>, vector<1x256xf32>
    %72 = vector.broadcast %71 : vector<1x256xf32> to vector<8x256xf32>
    %73 = arith.addf %70, %72 : vector<8x256xf32>
    %74 = arith.negf %73 : vector<8x256xf32>
    %75 = math.exp %74 : vector<8x256xf32>
    %cst_35 = arith.constant 1.000000e+00 : f32
    %76 = vector.broadcast %cst_35 : f32 to vector<8x256xf32>
    %77 = arith.addf %76, %75 : vector<8x256xf32>
    %78 = arith.divf %76, %77 : vector<8x256xf32>
    %c0_36 = arith.constant 0 : index
    %c0_37 = arith.constant 0 : index
    %79 = vector.load %arg9[%c0_36, %c0_37] : memref<8x256xf32, #tpu.memory_space<vmem>>, vector<8x256xf32>
    tpu.vector_store %arg9[%c0_36, %c0_37], %78 {strides = array<i32>} : memref<8x256xf32, #tpu.memory_space<vmem>>, vector<8x256xf32>,
    return
  }
}

</mosaic_0001>

<bundles_post_ra>
// kernel: forward.1
= control target key start
LH: loop header
LB: loop body
LE: loop exit
PB: predicated region body
PF: predicated region fallthrough
CT: control target
= control target key end

     0   :  { %14 = vsyncpa [#allocation3], 0  ;;  %s2757_s0 = inlined_call_operand.vmem [shape: bf16[8,2048], index: 0, kind: input, shape index: {}]   ;;  %s2758_s1 = inlined_call_operand.hbm [shape: bf16[2048,128], index: 1, kind: input, shape index: {}]   ;;  %s2759_s2 = inlined_call_operand.vmem [shape: f32[1,128], index: 2, kind: input, shape index: {}]   ;;  %s2760_s3 = inlined_call_operand.vmem [shape: f32[1,128], index: 3, kind: input, shape index: {}]   ;;  %s2761_s4 = inlined_call_operand.vmem [shape: bf16[128,128], index: 4, kind: input, shape index: {}]   ;;  %s2762_s5 = inlined_call_operand.vmem [shape: f32[1,128], index: 5, kind: input, shape index: {}]   ;;  %s2763_s6 = inlined_call_operand.vmem [shape: f32[1,128], index: 6, kind: input, shape index: {}]   ;;  %s2764_s7 = inlined_call_operand.vmem [shape: bf16[128,256], index: 7, kind: input, shape index: {}]   ;;  %s2765_s8 = inlined_call_operand.vmem [shape: f32[1,256], index: 8, kind: input, shape index: {}]   ;;  %s2766_s9 = inlined_call_operand.hbm [shape: f32[8,256], index: 9, kind: output, shape index: {}]  }
   0x1   :  { %15 = vsyncpa [#allocation4], 0  ;;  %s22_s11 = sshll.u32 %s2758_s1, 4  ;;  %s2531_s12 = smov [#allocation2]   ;;  %s23_s11 = int_to_ptr.hbm [resolvable:$true] %s22_s11 }
   0x2   :  { %s24_s13 = sshll.u32 %s2531_s12, 4  ;;  %s2532_s14 = smov 64   ;;  %s25_s13 = int_to_ptr.vmem [resolvable:$true] %s24_s13 }
   0x3   :  { %s2533_s15 = smov 4  }
   0x4   :  { %30 = dma.hbm_to_vmem [thread:$0]  %s23_s11, 16384, %s25_s13, [#allocation3], %s2532_s14, %s2532_s14, %s2533_s15  }
   0x5   :  { %2527 = dma.done.wait [#allocation3], 16384  }
   0x6   :  { %2528 = vsyncadd [#allocation3], 4294950912  ;;  %v2314_v0 = vld [vmem:[#allocation2 + $0x38] sm:$0xff]  ;;  %v2313_v4 = vld [vmem:[#allocation2 + $0x30] sm:$0xff]  ;;  %s1687_s20 = sshll.u32 %s2766_s9, 4  ;;  %s1688_s20 = int_to_ptr.hbm [resolvable:$true] %s1687_s20 }
   0x7   :  { %v2322_v1 = vld [vmem:[#allocation2 + $0x78] sm:$0xff]  ;;  %1137 = vmatpush.bf16.msra.mxu0 %v2314_v0  ;;  %v2321_v5 = vld [vmem:[#allocation2 + $0x70] sm:$0xff]  ;;  %v2312_v8 = vld [vmem:[#allocation2 + $0x28] sm:$0xff] }
   0x8   :  { %v2330_v2 = vld [vmem:[#allocation2 + $0xb8] sm:$0xff]  ;;  %1150 = vmatpush.bf16.msra.mxu1 %v2322_v1  ;;  %v2329_v6 = vld [vmem:[#allocation2 + $0xb0] sm:$0xff]  ;;  %v2320_v9 = vld [vmem:[#allocation2 + $0x68] sm:$0xff] }
   0x9   :  { %v2338_v3 = vld [vmem:[#allocation2 + $0xf8] sm:$0xff]  ;;  %1163 = vmatpush.bf16.msra.mxu2 %v2330_v2  ;;  %v2337_v7 = vld [vmem:[#allocation2 + $0xf0] sm:$0xff]  ;;  %v2328_v10 = vld [vmem:[#allocation2 + $0xa8] sm:$0xff] }
   0xa   :  { %1176 = vmatpush.bf16.msra.mxu3 %v2338_v3  ;;  %v2336_v11 = vld [vmem:[#allocation2 + $0xe8] sm:$0xff]  ;;  %v2311_v12 = vld [vmem:[#allocation2 + $0x20] sm:$0xff]  ;;  %v2310_v16 = vld [vmem:[#allocation2 + $0x18] sm:$0xff] }
   0xb   :  { %1138 = vmatpush.bf16.msra.mxu0 %v2313_v4  ;;  %v2319_v13 = vld [vmem:[#allocation2 + $0x60] sm:$0xff]  ;;  %v2318_v17 = vld [vmem:[#allocation2 + $0x58] sm:$0xff]  ;;  %v2309_v20 = vld [vmem:[#allocation2 + $0x10] sm:$0xff] }
   0xc   :  { %1151 = vmatpush.bf16.msra.mxu1 %v2321_v5  ;;  %v2327_v14 = vld [vmem:[#allocation2 + $0xa0] sm:$0xff]  ;;  %v2326_v18 = vld [vmem:[#allocation2 + $0x98] sm:$0xff]  ;;  %v2317_v21 = vld [vmem:[#allocation2 + $0x50] sm:$0xff] }
   0xd   :  { %1164 = vmatpush.bf16.msra.mxu2 %v2329_v6  ;;  %v2335_v15 = vld [vmem:[#allocation2 + $0xe0] sm:$0xff]  ;;  %v2334_v19 = vld [vmem:[#allocation2 + $0xd8] sm:$0xff]  ;;  %v2325_v22 = vld [vmem:[#allocation2 + $0x90] sm:$0xff] }
   0xe   :  { %1177 = vmatpush.bf16.msra.mxu3 %v2337_v7  ;;  %v2333_v23 = vld [vmem:[#allocation2 + $0xd0] sm:$0xff]  ;;  %v2308_v24 = vld [vmem:[#allocation2 + $0x8] sm:$0xff]  ;;  %v49_v29 = vld [vmem:[%s2757_s0] sm:$0xff] }
   0xf   :  { %1139 = vmatpush.bf16.msra.mxu0 %v2312_v8  ;;  %v2316_v25 = vld [vmem:[#allocation2 + $0x48] sm:$0xff]  ;;  %v2307_v30 = vld [vmem:[#allocation2] sm:$0xff]  ;;  %v321_v33 = vunpack.c.l.b16 %v49_v29  ;;  %v322_v37 = vunpack.c.h.b16 %v49_v29  ;;  %v2346_v38 = vld [vmem:[#allocation2 + $0x138] sm:$0xff] }
  0x10   :  { %1152 = vmatpush.bf16.msra.mxu1 %v2320_v9  ;;  %v2324_v26 = vld [vmem:[#allocation2 + $0x88] sm:$0xff]  ;;  %v2315_v31 = vld [vmem:[#allocation2 + $0x40] sm:$0xff]  ;;  %v2354_v39 = vld [vmem:[#allocation2 + $0x178] sm:$0xff] }
  0x11   :  { %1165 = vmatpush.bf16.msra.mxu2 %v2328_v10  ;;  %v2332_v27 = vld [vmem:[#allocation2 + $0xc8] sm:$0xff]  ;;  %v2323_v34 = vld [vmem:[#allocation2 + $0x80] sm:$0xff]  ;;  %v2362_v40 = vld [vmem:[#allocation2 + $0x1b8] sm:$0xff]  ;;  %v337_v43 = vpack.c.b16 %v321_v33, %v321_v33  ;;  %v338_v45 = vpack.c.b16 %v322_v37, %v322_v37 }
  0x12   :  { %1178 = vmatpush.bf16.msra.mxu3 %v2336_v11  ;;  %v50_v28 = vld [vmem:[%s2757_s0 + $0x8] sm:$0xff]  ;;  %v2331_v35 = vld [vmem:[#allocation2 + $0xc0] sm:$0xff]  ;;  %v2370_v41 = vld [vmem:[#allocation2 + $0x1f8] sm:$0xff] }
  0x13   :  { %1140 = vmatpush.bf16.msra.mxu0 %v2311_v12  ;;  %v323_v32 = vunpack.c.l.b16 %v50_v28  ;;  %v324_v36 = vunpack.c.h.b16 %v50_v28  ;;  %v2345_v46 = vld [vmem:[#allocation2 + $0x130] sm:$0xff]  ;;  %v2344_v50 = vld [vmem:[#allocation2 + $0x128] sm:$0xff]  ;;  %v2343_v54 = vld [vmem:[#allocation2 + $0x120] sm:$0xff] }
  0x14   :  { %1153 = vmatpush.bf16.msra.mxu1 %v2319_v13  ;;  %v2353_v47 = vld [vmem:[#allocation2 + $0x170] sm:$0xff]  ;;  %v2352_v51 = vld [vmem:[#allocation2 + $0x168] sm:$0xff]  ;;  %v2351_v55 = vld [vmem:[#allocation2 + $0x160] sm:$0xff] }
  0x15   :  { %1166 = vmatpush.bf16.msra.mxu2 %v2327_v14  ;;  %v339_v42 = vpack.c.b16 %v323_v32, %v323_v32  ;;  %v340_v44 = vpack.c.b16 %v324_v36, %v324_v36  ;;  %v2361_v48 = vld [vmem:[#allocation2 + $0x1b0] sm:$0xff]  ;;  %v2360_v52 = vld [vmem:[#allocation2 + $0x1a8] sm:$0xff]  ;;  %v2359_v56 = vld [vmem:[#allocation2 + $0x1a0] sm:$0xff] }
  0x16   :  { %1179 = vmatpush.bf16.msra.mxu3 %v2335_v15  ;;  %v2369_v49 = vld [vmem:[#allocation2 + $0x1f0] sm:$0xff]  ;;  %v2368_v53 = vld [vmem:[#allocation2 + $0x1e8] sm:$0xff]  ;;  %v2367_v57 = vld [vmem:[#allocation2 + $0x1e0] sm:$0xff] }
  0x17   :  { %1141 = vmatpush.bf16.msra.mxu0 %v2310_v16  ;;  %v2342_v58 = vld [vmem:[#allocation2 + $0x118] sm:$0xff]  ;;  %v2341_v62 = vld [vmem:[#allocation2 + $0x110] sm:$0xff]  ;;  %v2340_v2 = vld [vmem:[#allocation2 + $0x108] sm:$0xff] }
  0x18   :  { %1154 = vmatpush.bf16.msra.mxu1 %v2318_v17  ;;  %v2350_v59 = vld [vmem:[#allocation2 + $0x158] sm:$0xff]  ;;  %v2349_v63 = vld [vmem:[#allocation2 + $0x150] sm:$0xff]  ;;  %v2348_v3 = vld [vmem:[#allocation2 + $0x148] sm:$0xff] }
  0x19   :  { %1167 = vmatpush.bf16.msra.mxu2 %v2326_v18  ;;  %v2358_v60 = vld [vmem:[#allocation2 + $0x198] sm:$0xff]  ;;  %v2357_v0 = vld [vmem:[#allocation2 + $0x190] sm:$0xff]  ;;  %v2356_v4 = vld [vmem:[#allocation2 + $0x188] sm:$0xff] }
  0x1a   :  { %1180 = vmatpush.bf16.msra.mxu3 %v2334_v19  ;;  %v2366_v61 = vld [vmem:[#allocation2 + $0x1d8] sm:$0xff]  ;;  %v2365_v1 = vld [vmem:[#allocation2 + $0x1d0] sm:$0xff]  ;;  %v2364_v5 = vld [vmem:[#allocation2 + $0x1c8] sm:$0xff] }
  0x1b   :  { %1142 = vmatpush.bf16.msra.mxu0 %v2309_v20  ;;  %v52_v6 = vld [vmem:[%s2757_s0 + $0x18] sm:$0xff]  ;;  %v51_v7 = vld [vmem:[%s2757_s0 + $0x10] sm:$0xff]  ;;  %v2339_v8 = vld [vmem:[#allocation2 + $0x100] sm:$0xff] }
  0x1c   :  { %1155 = vmatpush.bf16.msra.mxu1 %v2317_v21  ;;  %v2347_v9 = vld [vmem:[#allocation2 + $0x140] sm:$0xff]  ;;  %v327_v10 = vunpack.c.l.b16 %v52_v6  ;;  %v325_v11 = vunpack.c.l.b16 %v51_v7  ;;  %v328_v14 = vunpack.c.h.b16 %v52_v6  ;;  %v326_v15 = vunpack.c.h.b16 %v51_v7  ;;  %v2378_v16 = vld [vmem:[#allocation2 + $0x238] sm:$0xff]  ;;  %v2376_v28 = vld [vmem:[#allocation2 + $0x228] sm:$0xff] }
  0x1d   :  { %1168 = vmatpush.bf16.msra.mxu2 %v2325_v22  ;;  %v2355_v12 = vld [vmem:[#allocation2 + $0x180] sm:$0xff]  ;;  %v2386_v17 = vld [vmem:[#allocation2 + $0x278] sm:$0xff]  ;;  %v2384_v29 = vld [vmem:[#allocation2 + $0x268] sm:$0xff] }
  0x1e   :  { %1181 = vmatpush.bf16.msra.mxu3 %v2333_v23  ;;  %v2363_v13 = vld [vmem:[#allocation2 + $0x1c0] sm:$0xff]  ;;  %v2394_v18 = vld [vmem:[#allocation2 + $0x2b8] sm:$0xff]  ;;  %v343_v20 = vpack.c.b16 %v327_v10, %v327_v10  ;;  %v341_v21 = vpack.c.b16 %v325_v11, %v325_v11  ;;  %v344_v22 = vpack.c.b16 %v328_v14, %v328_v14  ;;  %v342_v23 = vpack.c.b16 %v326_v15, %v326_v15  ;;  %v2408_v6 = vld [vmem:[#allocation2 + $0x328] sm:$0xff] }
  0x1f   :  { %1143 = vmatpush.bf16.msra.mxu0 %v2308_v24  ;;  %v2402_v19 = vld [vmem:[#allocation2 + $0x2f8] sm:$0xff]  ;;  %v2377_v24 = vld [vmem:[#allocation2 + $0x230] sm:$0xff]  ;;  %v2375_v32 = vld [vmem:[#allocation2 + $0x220] sm:$0xff] }
  0x20   :  { %1156 = vmatpush.bf16.msra.mxu1 %v2316_v25  ;;  %v2385_v25 = vld [vmem:[#allocation2 + $0x270] sm:$0xff]  ;;  %v2383_v33 = vld [vmem:[#allocation2 + $0x260] sm:$0xff]  ;;  %v2374_v36 = vld [vmem:[#allocation2 + $0x218] sm:$0xff] }
  0x21   :  { %1169 = vmatpush.bf16.msra.mxu2 %v2324_v26  ;;  %v2393_v26 = vld [vmem:[#allocation2 + $0x2b0] sm:$0xff]  ;;  %v2382_v37 = vld [vmem:[#allocation2 + $0x258] sm:$0xff]  ;;  %v2416_v7 = vld [vmem:[#allocation2 + $0x368] sm:$0xff] }
  0x22   :  { %1182 = vmatpush.bf16.msra.mxu3 %v2332_v27  ;;  %v2401_v27 = vld [vmem:[#allocation2 + $0x2f0] sm:$0xff]  ;;  %v2407_v10 = vld [vmem:[#allocation2 + $0x320] sm:$0xff]  ;;  %v2406_v14 = vld [vmem:[#allocation2 + $0x318] sm:$0xff] }
  0x23   :  { %1144 = vmatpush.bf16.msra.mxu0 %v2307_v30  ;;  %v2392_v30 = vld [vmem:[#allocation2 + $0x2a8] sm:$0xff]  ;;  %v2415_v11 = vld [vmem:[#allocation2 + $0x360] sm:$0xff]  ;;  %v2414_v15 = vld [vmem:[#allocation2 + $0x358] sm:$0xff] }
  0x24   :  { %1157 = vmatpush.bf16.msra.mxu1 %v2315_v31  ;;  %v2400_v31 = vld [vmem:[#allocation2 + $0x2e8] sm:$0xff] }
  0x25   :  { %1170 = vmatpush.bf16.msra.mxu2 %v2323_v34  ;;  %v2391_v34 = vld [vmem:[#allocation2 + $0x2a0] sm:$0xff] }
  0x26   :  { %1183 = vmatpush.bf16.msra.mxu3 %v2331_v35  ;;  %1145 = vmatmul.bf16.vlgmr.msra.gmra.mxu0 %v337_v43  ;;  %v2399_v35 = vld [vmem:[#allocation2 + $0x2e0] sm:$0xff]  ;;  %v2397_v43 = vld [vmem:[#allocation2 + $0x2d0] sm:$0xff] }
  0x27   :  { %1189 = vmatpush.bf16.msrb.mxu0 %v2346_v38  ;;  %1158 = vmatmul.bf16.vlgmr.msra.gmra.mxu1 %v338_v45  ;;  %v2390_v38 = vld [vmem:[#allocation2 + $0x298] sm:$0xff]  ;;  %v2380_v45 = vld [vmem:[#allocation2 + $0x248] sm:$0xff] }
  0x28   :  { %1202 = vmatpush.bf16.msrb.mxu1 %v2354_v39  ;;  %1171 = vmatmul.bf16.vlgmr.msra.gmra.mxu2 %v339_v42  ;;  %v2398_v39 = vld [vmem:[#allocation2 + $0x2d8] sm:$0xff]  ;;  %v2389_v42 = vld [vmem:[#allocation2 + $0x290] sm:$0xff] }
  0x29   :  { %1215 = vmatpush.bf16.msrb.mxu2 %v2362_v40  ;;  %1184 = vmatmul.bf16.vlgmr.msra.gmra.mxu3 %v340_v44  ;;  %v2373_v40 = vld [vmem:[#allocation2 + $0x210] sm:$0xff]  ;;  %v2372_v44 = vld [vmem:[#allocation2 + $0x208] sm:$0xff] }
  0x2a   :  { %1228 = vmatpush.bf16.msrb.mxu3 %v2370_v41  ;;  %v2381_v41 = vld [vmem:[#allocation2 + $0x250] sm:$0xff] }
  0x2b   :  { %1190 = vmatpush.bf16.msrb.mxu0 %v2345_v46  ;;  %v2388_v46 = vld [vmem:[#allocation2 + $0x288] sm:$0xff] }
  0x2c   :  { %1203 = vmatpush.bf16.msrb.mxu1 %v2353_v47  ;;  %v2396_v47 = vld [vmem:[#allocation2 + $0x2c8] sm:$0xff] }
  0x2d   :  { %1216 = vmatpush.bf16.msrb.mxu2 %v2361_v48  ;;  %v53_v48 = vld [vmem:[%s2757_s0 + $0x20] sm:$0xff] }
  0x2e   :  { %1229 = vmatpush.bf16.msrb.mxu3 %v2369_v49  ;;  %v54_v49 = vld [vmem:[%s2757_s0 + $0x28] sm:$0xff] }
  0x2f   :  { %1191 = vmatpush.bf16.msrb.mxu0 %v2344_v50  ;;  %v2371_v50 = vld [vmem:[#allocation2 + $0x200] sm:$0xff] }
  0x30   :  { %1204 = vmatpush.bf16.msrb.mxu1 %v2352_v51  ;;  %v2379_v51 = vld [vmem:[#allocation2 + $0x240] sm:$0xff] }
  0x31   :  { %1217 = vmatpush.bf16.msrb.mxu2 %v2360_v52  ;;  %v329_v52 = vunpack.c.l.b16 %v53_v48 }
  0x32   :  { %1230 = vmatpush.bf16.msrb.mxu3 %v2368_v53  ;;  %v331_v53 = vunpack.c.l.b16 %v54_v49 }
  0x33   :  { %1192 = vmatpush.bf16.msrb.mxu0 %v2343_v54  ;;  %v2387_v54 = vld [vmem:[#allocation2 + $0x280] sm:$0xff] }
  0x34   :  { %1205 = vmatpush.bf16.msrb.mxu1 %v2351_v55  ;;  %v2395_v55 = vld [vmem:[#allocation2 + $0x2c0] sm:$0xff] }
  0x35   :  { %1218 = vmatpush.bf16.msrb.mxu2 %v2359_v56  ;;  %v330_v56 = vunpack.c.h.b16 %v53_v48 }
  0x36   :  { %1231 = vmatpush.bf16.msrb.mxu3 %v2367_v57  ;;  %v332_v57 = vunpack.c.h.b16 %v54_v49 }
  0x37   :  { %1193 = vmatpush.bf16.msrb.mxu0 %v2342_v58  ;;  %v2410_v58 = vld [vmem:[#allocation2 + $0x338] sm:$0xff] }
  0x38   :  { %1206 = vmatpush.bf16.msrb.mxu1 %v2350_v59  ;;  %v2418_v59 = vld [vmem:[#allocation2 + $0x378] sm:$0xff] }
  0x39   :  { %1219 = vmatpush.bf16.msrb.mxu2 %v2358_v60  ;;  %v2426_v60 = vld [vmem:[#allocation2 + $0x3b8] sm:$0xff] }
  0x3a   :  { %1232 = vmatpush.bf16.msrb.mxu3 %v2366_v61  ;;  %v2434_v61 = vld [vmem:[#allocation2 + $0x3f8] sm:$0xff] }
  0x3b   :  { %1194 = vmatpush.bf16.msrb.mxu0 %v2341_v62  ;;  %v345_v62 = vpack.c.b16 %v329_v52, %v329_v52 }
  0x3c   :  { %1207 = vmatpush.bf16.msrb.mxu1 %v2349_v63  ;;  %v347_v63 = vpack.c.b16 %v331_v53, %v331_v53 }
  0x3d   :  { %1220 = vmatpush.bf16.msrb.mxu2 %v2357_v0  ;;  %v346_v0 = vpack.c.b16 %v330_v56, %v330_v56 }
  0x3e   :  { %1233 = vmatpush.bf16.msrb.mxu3 %v2365_v1  ;;  %v348_v1 = vpack.c.b16 %v332_v57, %v332_v57 }
  0x3f   :  { %1195 = vmatpush.bf16.msrb.mxu0 %v2340_v2  ;;  %v2409_v2 = vld [vmem:[#allocation2 + $0x330] sm:$0xff] }
  0x40   :  { %1208 = vmatpush.bf16.msrb.mxu1 %v2348_v3  ;;  %v2417_v3 = vld [vmem:[#allocation2 + $0x370] sm:$0xff] }
  0x41   :  { %1221 = vmatpush.bf16.msrb.mxu2 %v2356_v4  ;;  %v2425_v4 = vld [vmem:[#allocation2 + $0x3b0] sm:$0xff] }
  0x42   :  { %1234 = vmatpush.bf16.msrb.mxu3 %v2364_v5  ;;  %v2433_v5 = vld [vmem:[#allocation2 + $0x3f0] sm:$0xff] }
  0x43   :  { %1196 = vmatpush.bf16.msrb.mxu0 %v2339_v8  ;;  %v2424_v8 = vld [vmem:[#allocation2 + $0x3a8] sm:$0xff] }
  0x44   :  { %1209 = vmatpush.bf16.msrb.mxu1 %v2347_v9  ;;  %v2432_v9 = vld [vmem:[#allocation2 + $0x3e8] sm:$0xff] }
  0x45   :  { %1222 = vmatpush.bf16.msrb.mxu2 %v2355_v12  ;;  %v2423_v12 = vld [vmem:[#allocation2 + $0x3a0] sm:$0xff] }
  0x46   :  { %1235 = vmatpush.bf16.msrb.mxu3 %v2363_v13  ;;  %1197 = vmatmul.bf16.vlgmr.msrb.gmra.mxu0 %v341_v21  ;;  %v2431_v13 = vld [vmem:[#allocation2 + $0x3e0] sm:$0xff]  ;;  %v2429_v21 = vld [vmem:[#allocation2 + $0x3d0] sm:$0xff] }
  0x47   :  { %1241 = vmatpush.bf16.msra.mxu0 %v2378_v16  ;;  %1210 = vmatmul.bf16.vlgmr.msrb.gmra.mxu1 %v342_v23  ;;  %v2422_v16 = vld [vmem:[#allocation2 + $0x398] sm:$0xff]  ;;  %v2412_v23 = vld [vmem:[#allocation2 + $0x348] sm:$0xff] }
  0x48   :  { %1254 = vmatpush.bf16.msra.mxu1 %v2386_v17  ;;  %1223 = vmatmul.bf16.vlgmr.msrb.gmra.mxu2 %v343_v20  ;;  %v2430_v17 = vld [vmem:[#allocation2 + $0x3d8] sm:$0xff]  ;;  %v2421_v20 = vld [vmem:[#allocation2 + $0x390] sm:$0xff] }
  0x49   :  { %1267 = vmatpush.bf16.msra.mxu2 %v2394_v18  ;;  %1236 = vmatmul.bf16.vlgmr.msrb.gmra.mxu3 %v344_v22  ;;  %v2405_v18 = vld [vmem:[#allocation2 + $0x310] sm:$0xff]  ;;  %v2404_v22 = vld [vmem:[#allocation2 + $0x308] sm:$0xff] }
  0x4a   :  { %1280 = vmatpush.bf16.msra.mxu3 %v2402_v19  ;;  %v2413_v19 = vld [vmem:[#allocation2 + $0x350] sm:$0xff] }
  0x4b   :  { %1242 = vmatpush.bf16.msra.mxu0 %v2377_v24  ;;  %v55_v24 = vld [vmem:[%s2757_s0 + $0x30] sm:$0xff] }
  0x4c   :  { %1255 = vmatpush.bf16.msra.mxu1 %v2385_v25  ;;  %v2420_v25 = vld [vmem:[#allocation2 + $0x388] sm:$0xff] }
  0x4d   :  { %1268 = vmatpush.bf16.msra.mxu2 %v2393_v26  ;;  %v2428_v26 = vld [vmem:[#allocation2 + $0x3c8] sm:$0xff] }
  0x4e   :  { %1281 = vmatpush.bf16.msra.mxu3 %v2401_v27  ;;  %v56_v27 = vld [vmem:[%s2757_s0 + $0x38] sm:$0xff] }
  0x4f   :  { %1243 = vmatpush.bf16.msra.mxu0 %v2376_v28  ;;  %v333_v28 = vunpack.c.l.b16 %v55_v24 }
  0x50   :  { %1256 = vmatpush.bf16.msra.mxu1 %v2384_v29  ;;  %v334_v29 = vunpack.c.h.b16 %v55_v24  ;;  %v2439_v24 = vld [vmem:[%s2761_s4 + $0x20] sm:$0xff] }
  0x51   :  { %1269 = vmatpush.bf16.msra.mxu2 %v2392_v30  ;;  %v2403_v30 = vld [vmem:[#allocation2 + $0x300] sm:$0xff] }
  0x52   :  { %1282 = vmatpush.bf16.msra.mxu3 %v2400_v31  ;;  %v2411_v31 = vld [vmem:[#allocation2 + $0x340] sm:$0xff] }
  0x53   :  { %1244 = vmatpush.bf16.msra.mxu0 %v2375_v32  ;;  %v335_v32 = vunpack.c.l.b16 %v56_v27 }
  0x54   :  { %1257 = vmatpush.bf16.msra.mxu1 %v2383_v33  ;;  %v336_v33 = vunpack.c.h.b16 %v56_v27 }
  0x55   :  { %1270 = vmatpush.bf16.msra.mxu2 %v2391_v34  ;;  %v2419_v34 = vld [vmem:[#allocation2 + $0x380] sm:$0xff] }
  0x56   :  { %1283 = vmatpush.bf16.msra.mxu3 %v2399_v35  ;;  %v2427_v35 = vld [vmem:[#allocation2 + $0x3c0] sm:$0xff] }
  0x57   :  { %1245 = vmatpush.bf16.msra.mxu0 %v2374_v36  ;;  %v349_v36 = vpack.c.b16 %v333_v28, %v333_v28 }
  0x58   :  { %1258 = vmatpush.bf16.msra.mxu1 %v2382_v37  ;;  %v350_v37 = vpack.c.b16 %v334_v29, %v334_v29  ;;  %v2438_v29 = vld [vmem:[%s2761_s4 + $0x18] sm:$0xff] }
  0x59   :  { %1271 = vmatpush.bf16.msra.mxu2 %v2390_v38  ;;  %v351_v38 = vpack.c.b16 %v335_v32, %v335_v32 }
  0x5a   :  { %1284 = vmatpush.bf16.msra.mxu3 %v2398_v39  ;;  %v352_v39 = vpack.c.b16 %v336_v33, %v336_v33 }
  0x5b   :  { %1246 = vmatpush.bf16.msra.mxu0 %v2373_v40 }
  0x5c   :  { %1259 = vmatpush.bf16.msra.mxu1 %v2381_v41 }
  0x5d   :  { %1272 = vmatpush.bf16.msra.mxu2 %v2389_v42 }
  0x5e   :  { %1285 = vmatpush.bf16.msra.mxu3 %v2397_v43 }
  0x5f   :  { %1247 = vmatpush.bf16.msra.mxu0 %v2372_v44 }
  0x60   :  { %1260 = vmatpush.bf16.msra.mxu1 %v2380_v45 }
  0x61   :  { %1273 = vmatpush.bf16.msra.mxu2 %v2388_v46 }
  0x62   :  { %1286 = vmatpush.bf16.msra.mxu3 %v2396_v47 }
  0x63   :  { %1248 = vmatpush.bf16.msra.mxu0 %v2371_v50 }
  0x64   :  { %1261 = vmatpush.bf16.msra.mxu1 %v2379_v51 }
  0x65   :  { %1274 = vmatpush.bf16.msra.mxu2 %v2387_v54 }
  0x66   :  { %1287 = vmatpush.bf16.msra.mxu3 %v2395_v55  ;;  %1249 = vmatmul.bf16.vlgmr.msra.gmra.mxu0 %v345_v62 }
  0x67   :  { %1293 = vmatpush.bf16.msrb.mxu0 %v2410_v58  ;;  %1262 = vmatmul.bf16.vlgmr.msra.gmra.mxu1 %v346_v0 }
  0x68   :  { %1306 = vmatpush.bf16.msrb.mxu1 %v2418_v59  ;;  %1275 = vmatmul.bf16.vlgmr.msra.gmra.mxu2 %v347_v63 }
  0x69   :  { %1319 = vmatpush.bf16.msrb.mxu2 %v2426_v60  ;;  %1288 = vmatmul.bf16.vlgmr.msra.gmra.mxu3 %v348_v1 }
  0x6a   :  { %1332 = vmatpush.bf16.msrb.mxu3 %v2434_v61 }
  0x6b   :  { %1294 = vmatpush.bf16.msrb.mxu0 %v2409_v2 }
  0x6c   :  { %1307 = vmatpush.bf16.msrb.mxu1 %v2417_v3 }
  0x6d   :  { %1320 = vmatpush.bf16.msrb.mxu2 %v2425_v4 }
  0x6e   :  { %1333 = vmatpush.bf16.msrb.mxu3 %v2433_v5 }
  0x6f   :  { %1295 = vmatpush.bf16.msrb.mxu0 %v2408_v6 }
  0x70   :  { %1308 = vmatpush.bf16.msrb.mxu1 %v2416_v7 }
  0x71   :  { %1321 = vmatpush.bf16.msrb.mxu2 %v2424_v8 }
  0x72   :  { %1334 = vmatpush.bf16.msrb.mxu3 %v2432_v9 }
  0x73   :  { %1296 = vmatpush.bf16.msrb.mxu0 %v2407_v10  ;;  %v2442_v10 = vld [vmem:[%s2761_s4 + $0x38] sm:$0xff] }
  0x74   :  { %1309 = vmatpush.bf16.msrb.mxu1 %v2415_v11 }
  0x75   :  { %1322 = vmatpush.bf16.msrb.mxu2 %v2423_v12 }
  0x76   :  { %1335 = vmatpush.bf16.msrb.mxu3 %v2431_v13 }
  0x77   :  { %1297 = vmatpush.bf16.msrb.mxu0 %v2406_v14 }
  0x78   :  { %1310 = vmatpush.bf16.msrb.mxu1 %v2414_v15  ;;  %v2441_v15 = vld [vmem:[%s2761_s4 + $0x30] sm:$0xff] }
  0x79   :  { %1323 = vmatpush.bf16.msrb.mxu2 %v2422_v16 }
  0x7a   :  { %1336 = vmatpush.bf16.msrb.mxu3 %v2430_v17  ;;  %v2440_v17 = vld [vmem:[%s2761_s4 + $0x28] sm:$0xff] }
  0x7b   :  { %1298 = vmatpush.bf16.msrb.mxu0 %v2405_v18 }
  0x7c   :  { %1311 = vmatpush.bf16.msrb.mxu1 %v2413_v19 }
  0x7d   :  { %1324 = vmatpush.bf16.msrb.mxu2 %v2421_v20 }
  0x7e   :  { %1337 = vmatpush.bf16.msrb.mxu3 %v2429_v21 }
  0x7f   :  { %1299 = vmatpush.bf16.msrb.mxu0 %v2404_v22 }
  0x80   :  { %1312 = vmatpush.bf16.msrb.mxu1 %v2412_v23 }
  0x81   :  { %1325 = vmatpush.bf16.msrb.mxu2 %v2420_v25 }
  0x82   :  { %1338 = vmatpush.bf16.msrb.mxu3 %v2428_v26 }
  0x83   :  { %1300 = vmatpush.bf16.msrb.mxu0 %v2403_v30 }
  0x84   :  { %1313 = vmatpush.bf16.msrb.mxu1 %v2411_v31 }
  0x85   :  { %1326 = vmatpush.bf16.msrb.mxu2 %v2419_v34 }
  0x86   :  { %1339 = vmatpush.bf16.msrb.mxu3 %v2427_v35  ;;  %1301 = vmatmul.bf16.vlgmr.msrb.gmra.mxu0 %v349_v36  ;;  %v2437_v36 = vld [vmem:[%s2761_s4 + $0x10] sm:$0xff] }
  0x87   :  { %1314 = vmatmul.bf16.vlgmr.msrb.gmra.mxu1 %v350_v37  ;;  %1454 = vmatpush.bf16.msra.mxu0 %v2442_v10  ;;  %v2455_v10 = vld [vmem:[%s2764_s7 + $0x64] sm:$0xf] }
  0x88   :  { %1327 = vmatmul.bf16.vlgmr.msrb.gmra.mxu2 %v351_v38 }
  0x89   :  { %1340 = vmatmul.bf16.vlgmr.msrb.gmra.mxu3 %v352_v39 }
  0x8b   :  { %1455 = vmatpush.bf16.msra.mxu0 %v2441_v15  ;;  %v2454_v15 = vld [vmem:[%s2764_s7 + $0x54] sm:$0xf0] }
  0x8f   :  { %1456 = vmatpush.bf16.msra.mxu0 %v2440_v17 }
  0x93   :  { %1457 = vmatpush.bf16.msra.mxu0 %v2439_v24  ;;  %v2277_v24 = vld [vmem:[%s2764_s7 + $0x48] sm:$0xf0] }
  0x97   :  { %1458 = vmatpush.bf16.msra.mxu0 %v2438_v29  ;;  %v2267_v29 = vld [vmem:[%s2764_s7 + $0x30] sm:$0xf] }
  0x9b   :  { %1459 = vmatpush.bf16.msra.mxu0 %v2437_v36 }
  0xa3   :  { %v1146_v40 = vpop.f32.mrf.mxu0 }
  0xa4   :  { %v1159_v41 = vpop.f32.mrf.mxu1 }
  0xa5   :  { %v1160_v42 = vadd.f32 %v1159_v41, %v1146_v40  ;;  %v2436_v41 = vld [vmem:[%s2761_s4 + $0x8] sm:$0xff] }
  0xa6   :  { %1460 = vmatpush.bf16.msra.mxu0 %v2436_v41  ;;  %v2447_v41 = vld [vmem:[%s2764_s7 + $0x24] sm:$0xf] }
  0xab   :  { %v1172_v43 = vpop.f32.mrf.mxu2  ;;  %v1148_v46 = vpop.f32.mrf.mxu0 }
  0xac   :  { %v1173_v44 = vadd.f32 %v1172_v43, %v1160_v42  ;;  %v1185_v45 = vpop.f32.mrf.mxu3  ;;  %v1161_v48 = vpop.f32.mrf.mxu1 }
  0xae   :  { %v1186_v47 = vadd.f32 %v1185_v45, %v1173_v44  ;;  %v2435_v44 = vld [vmem:[%s2761_s4] sm:$0xff] }
  0xaf   :  { %1461 = vmatpush.bf16.msra.mxu0 %v2435_v44 }
  0xb3   :  { %v1174_v49 = vpop.f32.mrf.mxu2 }
  0xb4   :  { %v1187_v50 = vpop.f32.mrf.mxu3 }
  0xc3   :  { %v1198_v51 = vpop.f32.mrf.mxu0 }
  0xc4   :  { %v1211_v52 = vpop.f32.mrf.mxu1  ;;  %v1199_v61 = vadd.f32 %v1198_v51, %v1186_v47 }
  0xc6   :  { %v1212_v1 = vadd.f32 %v1211_v52, %v1199_v61 }
  0xcb   :  { %v1224_v53 = vpop.f32.mrf.mxu2  ;;  %v1200_v55 = vpop.f32.mrf.mxu0 }
  0xcc   :  { %v1237_v54 = vpop.f32.mrf.mxu3  ;;  %v1213_v56 = vpop.f32.mrf.mxu1  ;;  %v1225_v3 = vadd.f32 %v1224_v53, %v1212_v1 }
  0xce   :  { %v1238_v6 = vadd.f32 %v1237_v54, %v1225_v3  ;;  %v2458_v3 = vld [vmem:[%s2764_s7 + $0x74] sm:$0xf0] }
  0xd3   :  { %v1226_v57 = vpop.f32.mrf.mxu2 }
  0xd4   :  { %v1239_v58 = vpop.f32.mrf.mxu3  ;;  %v2463_v57 = vld [vmem:[%s2759_s2] ss:$0 sm:$0xff] }
  0xe3   :  { %v1250_v59 = vpop.f32.mrf.mxu0 }
  0xe4   :  { %v1263_v60 = vpop.f32.mrf.mxu1  ;;  %v1251_v7 = vadd.f32 %v1250_v59, %v1238_v6  ;;  %v2301_v6 = vld [vmem:[%s2764_s7 + $0x78] sm:$0xf0] }
  0xe6   :  { %v1264_v8 = vadd.f32 %v1263_v60, %v1251_v7  ;;  %v2464_v60 = vld [vmem:[%s2760_s3] ss:$0 sm:$0xff] }
  0xeb   :  { %v1276_v62 = vpop.f32.mrf.mxu2  ;;  %v1252_v0 = vpop.f32.mrf.mxu0 }
  0xec   :  { %v1289_v63 = vpop.f32.mrf.mxu3  ;;  %v1265_v2 = vpop.f32.mrf.mxu1  ;;  %v1277_v9 = vadd.f32 %v1276_v62, %v1264_v8  ;;  %v2291_v8 = vld [vmem:[%s2764_s7 + $0x60] sm:$0xf] }
  0xed   :  { %v2299_v2 = vld [vmem:[%s2764_s7 + $0x70] sm:$0xf] }
  0xee   :  { %v1290_v11 = vadd.f32 %v1289_v63, %v1277_v9  ;;  %v2456_v9 = vld [vmem:[%s2764_s7 + $0x64] sm:$0xf0] }
  0xf3   :  { %v1278_v4 = vpop.f32.mrf.mxu2 }
  0xf4   :  { %v1291_v5 = vpop.f32.mrf.mxu3  ;;  %v2457_v4 = vld [vmem:[%s2764_s7 + $0x74] sm:$0xf] }
  0xf5   :  { %v2300_v5 = vor.u32 %v2458_v3, %v2299_v2  ;;  %v2304_v7 = vor.u32 %v2457_v4, %v2301_v6 }
  0xf7   :  { %1614 = vmatpush.bf16.msra.mxu1 %v2300_v5  ;;  %1627 = vmatpush.bf16.msra.mxu2 %v2304_v7 }
 0x103   :  { %v1302_v12 = vpop.f32.mrf.mxu0 }
 0x104   :  { %v1315_v13 = vpop.f32.mrf.mxu1  ;;  %v1303_v14 = vadd.f32 %v1302_v12, %v1290_v11  ;;  %v2292_v11 = vor.u32 %v2456_v9, %v2291_v8  ;;  %v2293_v12 = vld [vmem:[%s2764_s7 + $0x68] sm:$0xf0] }
 0x106   :  { %v1316_v16 = vadd.f32 %v1315_v13, %v1303_v14  ;;  %v2296_v13 = vor.u32 %v2455_v10, %v2293_v12  ;;  %1615 = vmatpush.bf16.msra.mxu1 %v2292_v11  ;;  %v2283_v14 = vld [vmem:[%s2764_s7 + $0x50] sm:$0xf] }
 0x107   :  { %v2284_v17 = vor.u32 %v2454_v15, %v2283_v14  ;;  %v2465_v14 = vld [vmem:[%s2762_s5] ss:$0 sm:$0xff]  ;;  %s2534_s5 = smov [#allocation5]  }
 0x108   :  { %1628 = vmatpush.bf16.msra.mxu2 %v2296_v13 }
 0x10a   :  { %1616 = vmatpush.bf16.msra.mxu1 %v2284_v17  ;;  %v2466_v17 = vld [vmem:[%s2763_s6] ss:$0 sm:$0xff]  ;;  %s1685_s6 = sshll.u32 %s2534_s5, 4  ;;  %s1686_s6 = int_to_ptr.vmem [resolvable:$true] %s1685_s6 }
 0x10b   :  { %v1328_v18 = vpop.f32.mrf.mxu2  ;;  %v1304_v21 = vpop.f32.mrf.mxu0 }
 0x10c   :  { %v1341_v19 = vpop.f32.mrf.mxu3  ;;  %v1329_v20 = vadd.f32 %v1328_v18, %v1316_v16  ;;  %v1317_v22 = vpop.f32.mrf.mxu1  ;;  %v2453_v16 = vld [vmem:[%s2764_s7 + $0x54] sm:$0xf]  ;;  %v2285_v18 = vld [vmem:[%s2764_s7 + $0x58] sm:$0xf0]  ;;  %v2452_v21 = vld [vmem:[%s2764_s7 + $0x44] sm:$0xf0] }
 0x10d   :  { %v2451_v22 = vld [vmem:[%s2764_s7 + $0x44] sm:$0xf] }
 0x10e   :  { %v1342_v23 = vadd.f32 %v1341_v19, %v1329_v20  ;;  %v2288_v19 = vor.u32 %v2453_v16, %v2285_v18  ;;  %v2275_v20 = vld [vmem:[%s2764_s7 + $0x40] sm:$0xf] }
 0x110   :  { %v1345_v25 = vrot.slane %v1342_v23, 4  ;;  %v1351_v26 = vmul.f32 %v1342_v23, %v1342_v23  ;;  %1629 = vmatpush.bf16.msra.mxu2 %v2288_v19 }
 0x112   :  { %v1346_v27 = vadd.f32 %v1345_v25, %v1342_v23  ;;  %v1352_v28 = vrot.slane %v1351_v26, 4 }
 0x113   :  { %v1330_v30 = vpop.f32.mrf.mxu2 }
 0x114   :  { %v1343_v31 = vpop.f32.mrf.mxu3  ;;  %v1347_v32 = vrot.slane %v1346_v27, 2  ;;  %v1353_v33 = vadd.f32 %v1352_v28, %v1351_v26  ;;  %v2280_v26 = vor.u32 %v2451_v22, %v2277_v24  ;;  %v2450_v30 = vld [vmem:[%s2764_s7 + $0x34] sm:$0xf0] }
 0x115   :  { %v2449_v31 = vld [vmem:[%s2764_s7 + $0x34] sm:$0xf] }
 0x116   :  { %v1348_v34 = vadd.f32 %v1347_v32, %v1346_v27  ;;  %v1354_v35 = vrot.slane %v1353_v33, 2  ;;  %1630 = vmatpush.bf16.msra.mxu2 %v2280_v26 }
 0x118   :  { %v1349_v37 = vrot.slane %v1348_v34, 1  ;;  %v1355_v38 = vadd.f32 %v1354_v35, %v1353_v33  ;;  %v2269_v35 = vld [vmem:[%s2764_s7 + $0x38] sm:$0xf0] }
 0x119   :  { %v2272_v36 = vor.u32 %v2449_v31, %v2269_v35 }
 0x11a   :  { %v1350_v39 = vadd.f32 %v1349_v37, %v1348_v34  ;;  %v1356_v40 = vrot.slane %v1355_v38, 1  ;;  %v2268_v34 = vor.u32 %v2450_v30, %v2267_v29 }
 0x11b   :  { %1631 = vmatpush.bf16.msra.mxu2 %v2272_v36 }
 0x11c   :  { %v1357_v42 = vadd.f32 %v1356_v40, %v1355_v38  ;;  %v1358_v43 = vmul.f32 0.125, %v1350_v39  ;;  %v2259_v39 = vld [vmem:[%s2764_s7 + $0x20] sm:$0xf]  ;;  %v2448_v40 = vld [vmem:[%s2764_s7 + $0x24] sm:$0xf0] }
 0x11d   :  { %v2260_v44 = vor.u32 %v2448_v40, %v2259_v39 }
 0x11e   :  { %v1359_v45 = vmul.f32 0.125, %v1357_v42  ;;  %v1360_v46 = vmul.f32 %v1358_v43, %v1358_v43  ;;  %v1363_v56 = vsub.f32 %v1342_v23, %v1358_v43  ;;  %v2276_v23 = vor.u32 %v2452_v21, %v2275_v20 }
 0x120   :  { %v1361_v47 = vsub.f32 %v1359_v45, %v1360_v46  ;;  %1617 = vmatpush.bf16.msra.mxu1 %v2276_v23  ;;  %v2261_v45 = vld [vmem:[%s2764_s7 + $0x28] sm:$0xf0]  ;;  %v1528_v23 = vld [vmem:[%s2765_s8] sm:$0x3] }
 0x121   :  { %v1530_v24 = vperm.slane %v1528_v23, 0 }
 0x122   :  { %v1362_v48 = vmax.f32 %v1361_v47, 0.0  ;;  %v2264_v47 = vor.u32 %v2447_v41, %v2261_v45 }
 0x124   :  { %v1364_v49 = vadd.f32 1e-05, %v1362_v48  ;;  %1618 = vmatpush.bf16.msra.mxu1 %v2268_v34  ;;  %1632 = vmatpush.bf16.msra.mxu2 %v2264_v47 }
 0x126   :  { %2467 = vrsqrt.f32 %v1364_v49  ;;  %vm1371_vm1 = vweird.f32 %v1364_v49 }
 0x128   :  { %1619 = vmatpush.bf16.msra.mxu1 %v2260_v44 }
 0x12c   :  { %v2468_v50 = vpop.eup %2467 }
 0x12d   :  { %v1366_v51 = vmul.f32 %v2468_v50, %v1364_v49  ;;  %vm1372_vm0 = vweird.f32 %v2468_v50 }
 0x12e   :  { %vm1373_vm2 = vmor %vm1371_vm1, %vm1372_vm0 }
 0x12f   :  { %v1367_v52 = vmul.f32 %v2468_v50, %v1366_v51  ;;  %v2446_v51 = vld [vmem:[%s2764_s7 + $0x14] sm:$0xf0] }
 0x131   :  { %v1368_v53 = vmul.f32 0.5, %v1367_v52  ;;  %v2445_v52 = vld [vmem:[%s2764_s7 + $0x14] sm:$0xf] }
 0x133   :  { %v1369_v54 = vsub.f32 1.5, %v1368_v53 }
 0x135   :  { %v1370_v55 = vmul.f32 %v2468_v50, %v1369_v54 }
 0x137   :  { %v1374_v58 = vsel %vm1373_vm2, %v2468_v50, %v1370_v55  ;;  %v2251_v50 = vld [vmem:[%s2764_s7 + $0x10] sm:$0xf] }
 0x138   :  { %v1375_v59 = vmul.f32 %v1374_v58, %v1363_v56  ;;  %v2252_v55 = vor.u32 %v2446_v51, %v2251_v50  ;;  %v2253_v56 = vld [vmem:[%s2764_s7 + $0x18] sm:$0xf0] }
 0x13a   :  { %v1380_v61 = vmul.f32 %v2463_v57, %v1375_v59  ;;  %v2256_v57 = vor.u32 %v2445_v52, %v2253_v56  ;;  %1620 = vmatpush.bf16.msra.mxu1 %v2252_v55 }
 0x13c   :  { %v1385_v62 = vadd.f32 %v2464_v60, %v1380_v61  ;;  %v2243_v60 = vld [vmem:[%s2764_s7] sm:$0xf]  ;;  %v2444_v61 = vld [vmem:[%s2764_s7 + $0x4] sm:$0xf0]  ;;  %1633 = vmatpush.bf16.msra.mxu2 %v2256_v57 }
 0x13e   :  { %vm1386_vm3 = vcmp.ge.f32.partialorder %v1385_v62, 0.0  ;;  %v1387_v63 = vmul.f32 0.01, %v1385_v62 }
 0x140   :  { %v1388_v0 = vsel %vm1386_vm3, %v1385_v62, %v1387_v63  ;;  %v2244_v62 = vor.u32 %v2444_v61, %v2243_v60  ;;  %v2443_v63 = vld [vmem:[%s2764_s7 + $0x4] sm:$0xf] }
 0x141   :  { %v1389_v1 = vpack.c.bf16 %v1388_v0, %v1388_v0  ;;  %v2245_v0 = vld [vmem:[%s2764_s7 + $0x8] sm:$0xf0] }
 0x142   :  { %v2248_v3 = vor.u32 %v2443_v63, %v2245_v0  ;;  %1621 = vmatpush.bf16.msra.mxu1 %v2244_v62 }
 0x143   :  { %1462 = vmatmul.bf16.vlgmr.msra.gmra.mxu0 %v1389_v1 }
 0x144   :  { %1634 = vmatpush.bf16.msra.mxu2 %v2248_v3 }
 0x1c0   :  { %v2690_v25 = vpop.f32.mrf.mxu0 }
 0x1c1   :  { %v1467_v27 = vrot.slane %v2690_v25, 4  ;;  %v1473_v28 = vmul.f32 %v2690_v25, %v2690_v25 }
 0x1c3   :  { %v1468_v32 = vadd.f32 %v1467_v27, %v2690_v25  ;;  %v1474_v33 = vrot.slane %v1473_v28, 4 }
 0x1c5   :  { %v1469_v37 = vrot.slane %v1468_v32, 2  ;;  %v1475_v38 = vadd.f32 %v1474_v33, %v1473_v28  ;;  %v1531_v28 = vperm.slane %v1528_v23, 1 }
 0x1c7   :  { %v1470_v42 = vadd.f32 %v1469_v37, %v1468_v32  ;;  %v1476_v43 = vrot.slane %v1475_v38, 2 }
 0x1c8   :  { %v1465_v46 = vpop.f32.mrf.mxu0 }
 0x1c9   :  { %v1471_v48 = vrot.slane %v1470_v42, 1  ;;  %v1477_v49 = vadd.f32 %v1476_v43, %v1475_v38 }
 0x1cb   :  { %v1472_v53 = vadd.f32 %v1471_v48, %v1470_v42  ;;  %v1478_v54 = vrot.slane %v1477_v49, 1 }
 0x1cd   :  { %v1479_v58 = vadd.f32 %v1478_v54, %v1477_v49  ;;  %v1480_v59 = vmul.f32 0.125, %v1472_v53 }
 0x1cf   :  { %v1481_v1 = vmul.f32 0.125, %v1479_v58  ;;  %v1482_v2 = vmul.f32 %v1480_v59, %v1480_v59  ;;  %v1485_v13 = vsub.f32 %v2690_v25, %v1480_v59 }
 0x1d1   :  { %v1483_v4 = vsub.f32 %v1481_v1, %v1482_v2 }
 0x1d3   :  { %v1484_v5 = vmax.f32 %v1483_v4, 0.0 }
 0x1d5   :  { %v1486_v6 = vadd.f32 1e-05, %v1484_v5 }
 0x1d7   :  { %2469 = vrsqrt.f32 %v1486_v6  ;;  %vm1493_vm5 = vweird.f32 %v1486_v6 }
 0x1dd   :  { %v2470_v7 = vpop.eup %2469 }
 0x1de   :  { %v1488_v8 = vmul.f32 %v2470_v7, %v1486_v6  ;;  %vm1494_vm4 = vweird.f32 %v2470_v7 }
 0x1df   :  { %vm1495_vm6 = vmor %vm1493_vm5, %vm1494_vm4 }
 0x1e0   :  { %v1489_v9 = vmul.f32 %v2470_v7, %v1488_v8 }
 0x1e2   :  { %v1490_v10 = vmul.f32 0.5, %v1489_v9 }
 0x1e4   :  { %v1491_v11 = vsub.f32 1.5, %v1490_v10 }
 0x1e6   :  { %v1492_v12 = vmul.f32 %v2470_v7, %v1491_v11 }
 0x1e8   :  { %v1496_v15 = vsel %vm1495_vm6, %v2470_v7, %v1492_v12 }
 0x1e9   :  { %v1497_v16 = vmul.f32 %v1496_v15, %v1485_v13 }
 0x1eb   :  { %v1502_v18 = vmul.f32 %v2465_v14, %v1497_v16 }
 0x1ed   :  { %v1507_v19 = vadd.f32 %v2466_v17, %v1502_v18 }
 0x1ef   :  { %vm1508_vm7 = vcmp.ge.f32.partialorder %v1507_v19, 0.0  ;;  %v1509_v20 = vmul.f32 0.01, %v1507_v19 }
 0x1f1   :  { %v1510_v21 = vsel %vm1508_vm7, %v1507_v19, %v1509_v20 }
 0x1f2   :  { %v1511_v22 = vpack.c.bf16 %v1510_v21, %v1510_v21 }
 0x1f4   :  { %1622 = vmatmul.bf16.vlgmr.msra.gmra.mxu1 %v1511_v22  ;;  %1635 = vmatmul.bf16.vlgmr.msra.gmra.mxu2 %v1511_v22 }
 0x271   :  { %v1623_v25 = vpop.f32.mrf.mxu1 }
 0x272   :  { %v1624_v26 = vadd.f32 %v1623_v25, %v1530_v24 }
 0x274   :  { %v2305_v27 = vmul.f32 -1.442695, %v1624_v26 }
 0x276   :  { %2471 = vpow2.f32 %v2305_v27 }
 0x277   :  { %v1636_v29 = vpop.f32.mrf.mxu2 }
 0x278   :  { %v1637_v30 = vadd.f32 %v1636_v29, %v1531_v28 }
 0x279   :  { %v1625_v31 = vpop.f32.mrf.mxu1 }
 0x27a   :  { %v2306_v32 = vmul.f32 -1.442695, %v1637_v30 }
 0x27c   :  { %v2472_v33 = vpop.eup %2471  ;;  %2473 = vpow2.f32 %v2306_v32 }
 0x27d   :  { %v1646_v34 = vadd.f32 1.0, %v2472_v33 }
 0x27f   :  { %2475 = vrcp.f32 %v1646_v34  ;;  %v1638_v35 = vpop.f32.mrf.mxu2  ;;  %v1659_v41 = vand.u32 2147483648, %v1646_v34  ;;  %v1657_v43 = vand.u32 2147483647, %v1646_v34  ;;  %vm1653_vm9 = vweird.f32 %v1646_v34 }
 0x281   :  { %v1660_v47 = vor.u32 1.1754944e-38, %v1659_v41  ;;  %vm1658_vm11 = vcmp.eq.f32.partialorder %v1657_v43, 8.507059e+37 }
 0x282   :  { %v2474_v36 = vpop.eup %2473 }
 0x283   :  { %v1647_v37 = vadd.f32 1.0, %v2474_v36 }
 0x285   :  { %v2476_v38 = vpop.eup %2475  ;;  %2477 = vrcp.f32 %v1647_v37  ;;  %v1674_v51 = vand.u32 2147483648, %v1647_v37  ;;  %v1672_v53 = vand.u32 2147483647, %v1647_v37  ;;  %vm1668_vm13 = vweird.f32 %v1647_v37 }
 0x286   :  { %v1649_v39 = vmul.f32 %v2476_v38, %v1646_v34  ;;  %vm1654_vm8 = vweird.f32 %v2476_v38 }
 0x287   :  { %vm1655_vm10 = vmor %vm1653_vm9, %vm1654_vm8  ;;  %v1675_v55 = vor.u32 1.1754944e-38, %v1674_v51  ;;  %vm1673_vm15 = vcmp.eq.f32.partialorder %v1672_v53, 8.507059e+37 }
 0x288   :  { %v1650_v40 = vsub.f32 1.0, %v1649_v39 }
 0x28a   :  { %v1651_v42 = vmul.f32 %v2476_v38, %v1650_v40 }
 0x28b   :  { %v2478_v44 = vpop.eup %2477 }
 0x28c   :  { %v1664_v45 = vmul.f32 %v2478_v44, %v1647_v37  ;;  %v1652_v46 = vadd.f32 %v2476_v38, %v1651_v42  ;;  %vm1669_vm12 = vweird.f32 %v2478_v44 }
 0x28d   :  { %vm1670_vm14 = vmor %vm1668_vm13, %vm1669_vm12 }
 0x28e   :  { %v1665_v48 = vsub.f32 1.0, %v1664_v45  ;;  %v1656_v49 = vsel %vm1655_vm10, %v2476_v38, %v1652_v46 }
 0x28f   :  { %v1661_v50 = vsel %vm1658_vm11, %v1660_v47, %v1656_v49 }
 0x290   :  { %v1666_v52 = vmul.f32 %v2478_v44, %v1665_v48  ;;  %1678 = vst [vmem:[#allocation5] sm:$0xff] %v1661_v50 }
 0x292   :  { %v1667_v54 = vadd.f32 %v2478_v44, %v1666_v52 }
 0x294   :  { %v1671_v56 = vsel %vm1670_vm14, %v2478_v44, %v1667_v54 }
 0x295   :  { %v1676_v57 = vsel %vm1673_vm15, %v1675_v55, %v1671_v56 }
 0x296   :  { %1679 = vst [vmem:[#allocation5 + $0x8] sm:$0xff] %v1676_v57 }
 0x297   :  { %1690 = dma.vmem_to_hbm [thread:$0]  %s1686_s6, 256, %s1688_s20, [#allocation4]  }
 0x298   :  { %2529 = dma.done.wait [#allocation4], 256  }
 0x299   :  { %2530 = vsyncadd [#allocation4], 4294967040 }
 0x29a   :  { %1695 = vsyncpa [#allocation3], 1 }
 0x29b   :  { %1696 = vsyncpa [#allocation4], 1 }

</bundles_post_ra>
